<compile_context>
chip_gen: v5e
topology: v5e:2x2
jax: 0.10.0
libtpu: 0.0.40
codegen_flags: <defaults>
</compile_context>

<pallas_src>
import functools
import numpy as np

import jax
import jax.numpy as jnp
from jax.experimental import pallas as pl
from jax.experimental.pallas import tpu as pltpu

# ----------------------------------------------------------------- constants
NUM_GROUPS = 4
GN_EPS = 1e-5

C = 8                          # channels (in == out)
D = H = W = 8                  # input spatial dims
WP = 16                        # padded w-slots per row (real data at wp in [1, 9))
ROWS = D * H                   # 64 activation rows per sample, row = 8*d + h
LANES = WP * C                 # 128 lanes, lane = wp*8 + c
S_IN = D * H * W               # 512 voxels / sample at input resolution
S_OUT = 8 * S_IN               # 4096 voxels / sample after 2x upsampling
OUT_ROWS = (2 * D) * (2 * H)   # 256 output rows, row = 16*d' + h'
UP_LANES = 4 * LANES           # 512 lanes of the up intermediate: (slot, w', c)

SB = 8                         # samples per grid step
NR = SB * ROWS                 # 512 stacked activation rows per grid step


# -----------------------------------------------------------------------------
# pltpu.roll rotation-direction self check (guards against convention changes
# across jax versions).  Result is cached; it is resolved once before tracing.
# -----------------------------------------------------------------------------
_ROLL_SIGN = None


def _roll_probe_kernel(x_ref, o_ref):
    o_ref[...] = pltpu.roll(x_ref[...], 1, 0)


def _roll_shift_sign():
    global _ROLL_SIGN
    if _ROLL_SIGN is None:
        x = jnp.arange(8 * 128, dtype=jnp.float32).reshape(8, 128)
        y = pl.pallas_call(
            _roll_probe_kernel,
            out_shape=jax.ShapeDtypeStruct((8, 128), jnp.float32))(x)
        if bool(jnp.array_equal(y, jnp.roll(x, 1, axis=0))):
            _ROLL_SIGN = 1
        elif bool(jnp.array_equal(y, jnp.roll(x, -1, axis=0))):
            _ROLL_SIGN = -1
        else:
            raise RuntimeError("unexpected pltpu.roll semantics")
    return _ROLL_SIGN


# -----------------------------------------------------------------------------
# Fused BottleNeck kernel: one grid step == SB samples, everything in VMEM.
# -----------------------------------------------------------------------------
def _bottleneck_kernel(x_ref, w_in_ref, wc_ref, wup_ref, pmat_ref, seg_ref,
                       segt_ref, gmat_ref, gmatt_ref, pv_ref, o_ref, *,
                       roll_sign):
    f32 = jnp.float32
    bf16 = jnp.bfloat16

    seg = seg_ref[...]            # (SB, NR)        per-sample row-sum matrix
    segt = segt_ref[...]          # (NR, SB)        per-sample row broadcast
    gmat = gmat_ref[...]          # (UP_LANES, G)   lane -> group one-hot
    gmatt = gmatt_ref[...]        # (G, UP_LANES)   group -> lane broadcast
    pv = pv_ref[...]              # (17, UP_LANES)  packed per-channel params
    wmask = pv[16:17, :LANES]     # 1.0 on real (wp in [1,9)) lanes

    gm128 = gmat[:LANES, :]
    gmt128 = gmatt[:, :LANES]

    # ---- batched GroupNorm(4) + PReLU over SB stacked samples ---------------
    def gn_prelu(y, r0, lanes, n_vox, gm, gmt):
        gamma = pv[r0 + 1:r0 + 2, :lanes]
        beta = pv[r0 + 2:r0 + 3, :lanes]
        alpha = pv[r0 + 3:r0 + 4, :lanes]
        # per-sample lane sums of [y | y*y], then group reduce (fused dots)
        stats = jnp.dot(seg, jnp.concatenate([y, y * y], axis=1),
                        preferred_element_type=f32)                  # (SB, 2L)
        gs = jnp.dot(jnp.concatenate([stats[:, :lanes], stats[:, lanes:]],
                                     axis=0),
                     gm, preferred_element_type=f32)                 # (2SB, G)
        cnt = f32(n_vox * (C // NUM_GROUPS))
        mean = gs[:SB] / cnt
        var = gs[SB:] / cnt - mean * mean                            # biased var
        inv = jax.lax.rsqrt(var + GN_EPS)
        mi = jnp.dot(jnp.concatenate([mean, inv], axis=0), gmt,
                     preferred_element_type=f32)                     # (2SB, L)
        scale = mi[SB:] * gamma                                      # inv*gamma
        shift = beta - mi[:SB] * scale                               # beta-mean*scale
        ss = jnp.dot(segt, jnp.concatenate([scale, shift], axis=1),
                     preferred_element_type=f32)                     # (NR, 2L)
        yn = y * ss[:, :lanes] + ss[:, lanes:]
        return jnp.where(yn >= 0.0, yn, alpha * yn)                  # PReLU

    # ---- 3x3x3 conv: rolls (XLU) + boundary masks for kd/kh, banded bf16
    #      block weights for kw + w-padding, taps grouped by kh (K=384 dots) --
    row = jax.lax.broadcasted_iota(jnp.int32, (NR, 1), 0)
    hh = row % H
    dd = (row // H) % D
    hmask = {0: (hh > 0).astype(f32), 2: (hh < H - 1).astype(f32)}
    dmask = {0: (dd > 0).astype(f32), 2: (dd < D - 1).astype(f32)}

    def tap(act, kd, kh):
        shift = (roll_sign * -(H * (kd - 1) + (kh - 1))) % NR
        t = act if shift == 0 else pltpu.roll(act, shift, 0)
        if kd != 1:
            t = t * dmask[kd]
        if kh != 1:
            t = t * hmask[kh]
        return t.astype(bf16)

    def conv3x3x3(act, ci):
        acc = jnp.zeros((NR, LANES), f32)
        for kh in range(3):
            xk = jnp.concatenate([tap(act, kd, kh) for kd in range(3)], axis=1)
            acc = acc + jnp.dot(xk, wc_ref[ci, kh], preferred_element_type=f32)
        return acc

    # ---- conv_input: 1x1x1 Conv3d + GN + PReLU ------------------------------
    x = x_ref[...].reshape(NR, W * C).astype(bf16)
    y = jnp.dot(x, w_in_ref[...], preferred_element_type=f32) + pv[0:1, :LANES]
    xin = gn_prelu(y, 0, LANES, S_IN, gm128, gmt128) * wmask

    # ---- encoder Block conv0 ------------------------------------------------
    y = conv3x3x3(xin, 0) + pv[4:5, :LANES]
    h0 = gn_prelu(y, 4, LANES, S_IN, gm128, gmt128) * wmask

    # ---- encoder Block conv1 + fused residual -------------------------------
    # TODO(synk): conv2 intentionally absent (create_layer_2=False); the
    # module's try/except paths are resolved statically here.
    y = conv3x3x3(h0, 1) + pv[8:9, :LANES]
    h1 = gn_prelu(y, 8, LANES, S_IN, gm128, gmt128)
    xres = h1 + xin                                   # x_res = Block(x) + x

    # ---- up_block: ConvTranspose3d(2,2,2) + GN + PReLU ----------------------
    # One wide N=512 dot; bias/GN/PReLU applied before the row permutation
    # (GroupNorm is invariant to the per-sample row order).
    yup = jnp.dot(xres.astype(bf16), wup_ref[...], preferred_element_type=f32)
    yup = yup + pv[12:13, :]
    yn = gn_prelu(yup, 12, UP_LANES, S_OUT, gmat, gmatt)            # (NR, 512)

    # Sub-pixel scatter: per sample one (256,256)@(256,128) permutation matmul
    # and a single dense store of the output tile (no RMW on o_ref).
    pmat = pmat_ref[...]
    for sb in range(SB):
        z = jnp.concatenate(
            [yn[ROWS * sb:ROWS * (sb + 1), LANES * s:LANES * (s + 1)]
             for s in range(4)], axis=0)                            # (256, 128)
        o_ref[sb] = jnp.dot(pmat, z, preferred_element_type=f32)


# -----------------------------------------------------------------------------
# Host-side operand packing (tiny einsums on ~kB weights, done once)
# -----------------------------------------------------------------------------
def _build_operands(p):
    f32 = np.float32
    wp = np.arange(WP)

    # 1x1x1 conv weight -> (64,128): input lane (w, cin) -> output lane (w+1, cout)
    t1 = (wp[None, :] == np.arange(W)[:, None] + 1).astype(f32)              # (8,16)
    w_in = np.einsum('wb,io->wibo', t1,
                     np.asarray(p['w_in'], f32)).reshape(W * C, LANES)

    # 3x3x3 conv weights -> (2,3,384,128): kw taps + w zero-padding folded into
    # banded 128x128 blocks, grouped by kh and stacked over kd along K.
    t3 = ((wp[None, :, None] >= 1) & (wp[None, :, None] <= W) &
          (wp[:, None, None] == wp[None, :, None]
           + np.arange(3)[None, None, :] - 1)).astype(f32)                   # (16,16,3)

    def banded(w):
        return np.einsum('abk,dhkio->hdaibo', t3,
                         np.asarray(w, f32)).reshape(3, 3 * LANES, LANES)

    wc = np.stack([banded(p['w0']), banded(p['w1'])], axis=0)                # (2,3,384,128)

    # ConvTranspose3d(2,2,2) -> (128,512): (wp,cin) -> lane 128*(2i+j)+8*(2w+k)+cout
    s1 = (wp[:, None] == np.arange(W)[None, :] + 1).astype(f32)              # (16,8)
    wup = np.einsum('aw,cijko->acijwko', s1,
                    np.asarray(p['w_up'], f32)).reshape(LANES, UP_LANES)

    # Sub-pixel row permutation: stacked row 64*(2i+j)+8d+h -> 32d+16i+2h+j.
    pmat = np.zeros((OUT_ROWS, OUT_ROWS), f32)
    for i in range(2):
        for j in range(2):
            for d in range(D):
                for h in range(H):
                    pmat[32 * d + 16 * i + 2 * h + j,
                         64 * (2 * i + j) + 8 * d + h] = 1.0

    # Per-sample segment matrices for batched GroupNorm stats / broadcast.
    seg = np.kron(np.eye(SB, dtype=f32), np.ones((1, ROWS), f32))            # (SB,NR)
    segt = np.ascontiguousarray(seg.T)                                       # (NR,SB)

    # Lane -> group one-hot maps (lane % 8 == channel; group = channel // 2).
    ch = np.arange(UP_LANES) % C
    gmat = (ch[:, None] // (C // NUM_GROUPS)
            == np.arange(NUM_GROUPS)[None, :]).astype(f32)                   # (512,4)
    gmatt = np.ascontiguousarray(gmat.T)                                     # (4,512)

    # Packed per-channel params: 4 rows (bias, gamma, beta, alpha) per stage
    # plus the real-lane mask, all tiled out to the 512-lane up layout.
    wmask = ((np.arange(LANES) // C >= 1) &
             (np.arange(LANES) // C <= W)).astype(f32)                       # (128,)
    tile_m = lambda v: np.tile(np.tile(np.asarray(v, f32), WP) * wmask, 4)   # masked bias
    tile_a = lambda v: np.tile(np.asarray(v, f32), 4 * WP)
    full = lambda a: np.full((UP_LANES,), a, f32)
    pv = np.stack([
        tile_m(p['b_in']), tile_a(p['g_in']), tile_a(p['be_in']), full(p['a_in']),
        tile_m(p['b0']), tile_a(p['g0']), tile_a(p['be0']), full(p['a0']),
        tile_m(p['b1']), tile_a(p['g1']), tile_a(p['be1']), full(p['a1']),
        tile_a(p['b_up']), tile_a(p['g_up']), tile_a(p['be_up']), full(p['a_up']),
        np.tile(wmask, 4),
    ], axis=0)                                                               # (17,512)

    bf = jnp.bfloat16
    return (jnp.asarray(w_in, bf), jnp.asarray(wc, bf), jnp.asarray(wup, bf),
            jnp.asarray(pmat), jnp.asarray(seg), jnp.asarray(segt),
            jnp.asarray(gmat), jnp.asarray(gmatt), jnp.asarray(pv))


# -----------------------------------------------------------------------------
# Full BottleNeck forward (channels-last NDHWC)
# -----------------------------------------------------------------------------
def bottleneck_forward(x, p):
    n, d, h, w, c = x.shape
    assert (d, h, w, c) == (D, H, W, C), "kernel specialized to 8^3 x 8 channels"
    assert n % SB == 0, f"batch must be a multiple of {SB}"
    roll_sign = _roll_shift_sign()
    w_in, wc, wup, pmat, seg, segt, gmat, gmatt, pv = _build_operands(p)
    x2 = x.reshape(n, ROWS, W * C)        # rows=(d,h), cols=(w,c): free relabel

    out = pl.pallas_call(
        functools.partial(_bottleneck_kernel, roll_sign=roll_sign),
        out_shape=jax.ShapeDtypeStruct((n, OUT_ROWS, LANES), jnp.float32),
        grid=(n // SB,),
        in_specs=[
            pl.BlockSpec((SB, ROWS, W * C), lambda i: (i, 0, 0)),            # x
            pl.BlockSpec((W * C, LANES), lambda i: (0, 0)),                  # w_in
            pl.BlockSpec((2, 3, 3 * LANES, LANES), lambda i: (0, 0, 0, 0)),  # conv wts
            pl.BlockSpec((LANES, UP_LANES), lambda i: (0, 0)),               # up wts
            pl.BlockSpec((OUT_ROWS, OUT_ROWS), lambda i: (0, 0)),            # permutation
            pl.BlockSpec((SB, NR), lambda i: (0, 0)),                        # seg
            pl.BlockSpec((NR, SB), lambda i: (0, 0)),                        # segT
            pl.BlockSpec((UP_LANES, NUM_GROUPS), lambda i: (0, 0)),          # group map
            pl.BlockSpec((NUM_GROUPS, UP_LANES), lambda i: (0, 0)),          # group bcast
            pl.BlockSpec((17, UP_LANES), lambda i: (0, 0)),                  # params
        ],
        out_specs=pl.BlockSpec((SB, OUT_ROWS, LANES), lambda i: (i, 0, 0)),
        compiler_params=pltpu.CompilerParams(
            dimension_semantics=("parallel",),
            vmem_limit_bytes=32 * 1024 * 1024),
    )(x2, w_in, wc, wup, pmat, seg, segt, gmat, gmatt, pv)

    # (N,256,128) rows=(d',h'), cols=(w',c)  ->  NDHWC; pure reshape, no transpose.
    return out.reshape(n, 2 * D, 2 * H, 2 * W, C)


# -----------------------------------------------------------------------------
# Deterministic parameter init (shapes follow the nn.Module __init__)
# -----------------------------------------------------------------------------
def init_params(key, c):
    ks = jax.random.split(key, 16)
    nrm = lambda k, shape, s: s * jax.random.normal(k, shape, jnp.float32)
    p = {}
    p['w_in'] = nrm(ks[0], (c, c), 0.30)             # 1x1x1 conv, (Cin, Cout)
    p['b_in'] = nrm(ks[1], (c,), 0.05)
    p['g_in'] = 1.0 + nrm(ks[2], (c,), 0.10)
    p['be_in'] = nrm(ks[3], (c,), 0.10)
    p['a_in'] = 0.25
    p['w0'] = nrm(ks[4], (3, 3, 3, c, c), 0.15)      # DHWIO
    p['b0'] = nrm(ks[5], (c,), 0.05)
    p['g0'] = 1.0 + nrm(ks[6], (c,), 0.10)
    p['be0'] = nrm(ks[7], (c,), 0.10)
    p['a0'] = 0.25
    p['w1'] = nrm(ks[8], (3, 3, 3, c, c), 0.15)
    p['b1'] = nrm(ks[9], (c,), 0.05)
    p['g1'] = 1.0 + nrm(ks[10], (c,), 0.10)
    p['be1'] = nrm(ks[11], (c,), 0.10)
    p['a1'] = 0.25
    p['w_up'] = nrm(ks[12], (c, 2, 2, 2, c), 0.20)   # (Cin, i, j, k, Cout)
    p['b_up'] = nrm(ks[13], (c,), 0.05)
    p['g_up'] = 1.0 + nrm(ks[14], (c,), 0.10)
    p['be_up'] = nrm(ks[15], (c,), 0.10)
    p['a_up'] = 0.25
    return p


# -----------------------------------------------------------------------------
# Pure-JAX f32 reference (sanity check of the fused Pallas kernel)
# -----------------------------------------------------------------------------
def ref_gn_prelu(y, gamma, beta, alpha, g=NUM_GROUPS, eps=GN_EPS):
    shp = y.shape
    n, c = shp[0], shp[-1]
    yg = y.reshape(n, -1, g, c // g)
    mean = yg.mean(axis=(1, 3), keepdims=True)
    var = ((yg - mean) ** 2).mean(axis=(1, 3), keepdims=True)
    yn = ((yg - mean) / jnp.sqrt(var + eps)).reshape(shp) * gamma + beta
    return jnp.where(yn >= 0, yn, alpha * yn)


def ref_forward(x, p):
    n, d, h, w, c = x.shape
    dn = ('NDHWC', 'DHWIO', 'NDHWC')
    xin = jnp.einsum('ndhwc,co->ndhwo', x, p['w_in']) + p['b_in']
    xin = ref_gn_prelu(xin, p['g_in'], p['be_in'], p['a_in'])
    t = jax.lax.conv_general_dilated(xin, p['w0'], (1, 1, 1),
                                     ((1, 1), (1, 1), (1, 1)),
                                     dimension_numbers=dn) + p['b0']
    t = ref_gn_prelu(t, p['g0'], p['be0'], p['a0'])
    t = jax.lax.conv_general_dilated(t, p['w1'], (1, 1, 1),
                                     ((1, 1), (1, 1), (1, 1)),
                                     dimension_numbers=dn) + p['b1']
    t = ref_gn_prelu(t, p['g1'], p['be1'], p['a1'])
    x_res = t + xin
    y8 = jnp.einsum('ndhwc,cijko->ndhwijko', x_res, p['w_up'])
    y = y8.transpose(0, 1, 4, 2, 5, 3, 6, 7).reshape(n, 2 * d, 2 * h, 2 * w, c)
    y = y + p['b_up']
    return ref_gn_prelu(y, p['g_up'], p['be_up'], p['a_up'])


if __name__ == "__main__":
    key = jax.random.PRNGKey(0)
    kx, kp = jax.random.split(key)
    N = 16                                           # 2 grid steps of SB=8 samples
    # PyTorch-style NCDHW input; transpose to NDHWC (channels-last) for TPU.
    x_ncdhw = jax.random.normal(kx, (N, C, D, H, W), jnp.float32)
    x = jnp.transpose(x_ncdhw, (0, 2, 3, 4, 1))
    params = init_params(kp, C)

    _roll_shift_sign()                               # resolve roll convention once

    fwd = jax.jit(functools.partial(bottleneck_forward, p=params))
    out = jax.block_until_ready(fwd(x))
    assert out.shape == (N, 2 * D, 2 * H, 2 * W, C), out.shape

    ref = ref_forward(x, params)
    err = float(jnp.max(jnp.abs(out - ref)))
    # bf16 MXU path for the conv contractions -> slightly looser tolerance.
    assert err < 8e-2, f"max abs err vs reference: {err}"
    print("KERNEL_OK")
</pallas_src>

<mosaic_0001>
module attributes {stable_mosaic.version = 11 : i64} {
  func.func @_roll_probe_kernel(%arg0: memref<8x128xf32, #tpu.memory_space<vmem>>, %arg1: memref<8x128xf32, #tpu.memory_space<vmem>>) attributes {dimension_semantics = [], scalar_prefetch = 0 : i64, scratch_operands = 0 : i64, tpu.core_type = #tpu.core_type<tc>} {
    %c0 = arith.constant 0 : index
    %c0_0 = arith.constant 0 : index
    %0 = vector.load %arg0[%c0, %c0_0] : memref<8x128xf32, #tpu.memory_space<vmem>>, vector<8x128xf32>
    %c1_i32 = arith.constant 1 : i32
    %1 = tpu.dynamic_rotate %0 by %c1_i32 dim 0 : vector<8x128xf32>, i32 -> vector<8x128xf32>
    %c0_1 = arith.constant 0 : index
    %c0_2 = arith.constant 0 : index
    %2 = vector.load %arg1[%c0_1, %c0_2] : memref<8x128xf32, #tpu.memory_space<vmem>>, vector<8x128xf32>
    tpu.vector_store %arg1[%c0_1, %c0_2], %1 {strides = array<i32>} : memref<8x128xf32, #tpu.memory_space<vmem>>, vector<8x128xf32>,
    return
  }
}

</mosaic_0001>

<bundles_post_ra>
// kernel: tpu_custom_call.1
= control target key start
LH: loop header
LB: loop body
LE: loop exit
PB: predicated region body
PF: predicated region fallthrough
CT: control target
= control target key end

     0   :  { %6 = vsyncpa [#allocation3], 0  ;;  %s115_s0 = inlined_call_operand.hbm [shape: f32[8,128], index: 0, kind: input, shape index: {}]   ;;  %s116_s1 = inlined_call_operand.hbm [shape: f32[8,128], index: 1, kind: output, shape index: {}]  }
   0x1   :  { %7 = vsyncpa [#allocation4], 0  ;;  %s13_s8 = sshll.u32 %s115_s0, 4  ;;  %s97_s9 = smov [#allocation2]   ;;  %s14_s8 = int_to_ptr.hbm [resolvable:$true] %s13_s8 }
   0x2   :  { %s15_s10 = sshll.u32 %s97_s9, 4  ;;  %s16_s10 = int_to_ptr.vmem [resolvable:$true] %s15_s10 }
   0x3   :  { %18 = dma.hbm_to_vmem [thread:$0]  %s14_s8, 128, %s16_s10, [#allocation3]  }
   0x4   :  { %93 = dma.done.wait [#allocation3], 128  }
   0x5   :  { %94 = vsyncadd [#allocation3], 4294967168  ;;  %s98_s11 = smov [#allocation5]   ;;  %s33_s15 = sshll.u32 %s116_s1, 4  ;;  %v23_v0 = vld [vmem:[#allocation2] sm:$0xff]  ;;  %s34_s15 = int_to_ptr.hbm [resolvable:$true] %s33_s15 }
   0x6   :  { %s31_s12 = sshll.u32 %s98_s11, 4  ;;  %v24_v1 = vrot.slane %v23_v0, 7  ;;  %s32_s12 = int_to_ptr.vmem [resolvable:$true] %s31_s12 }
   0x8   :  { %25 = vst [vmem:[#allocation5] sm:$0xff] %v24_v1 }
   0x9   :  { %36 = dma.vmem_to_hbm [thread:$0]  %s32_s12, 128, %s34_s15, [#allocation4]  }
   0xa   :  { %95 = dma.done.wait [#allocation4], 128  }
   0xb   :  { %96 = vsyncadd [#allocation4], 4294967168 }
   0xc   :  { %41 = vsyncpa [#allocation3], 1 }
   0xd   :  { %42 = vsyncpa [#allocation4], 1 }

</bundles_post_ra>
